<compile_context>
chip_gen: v7x
topology: tpu7x:2x2x1
jax: 0.10.0
libtpu: 0.0.40
codegen_flags: <defaults>
</compile_context>

<pallas_src>
import numpy as np
import jax
import jax.numpy as jnp
from jax.experimental import pallas as pl
from jax.experimental.pallas import tpu as pltpu

LANE = 128
SUBLANE = 8


def _round_up(x, m):
    return ((x + m - 1) // m) * m


# ---------------------------------------------------------------------------
# Pallas kernel
# ---------------------------------------------------------------------------

def _rbf_kernel(x_ref, wt_ref, o_ref):
    # o[b, o] = ||x[b]||^2 - 2 * x[b] . w[o] + ||w[o]||^2  == sum_i (x[b,i]-w[o,i])^2
    x = x_ref[...]                                           # (TB, D)   f32
    wt = wt_ref[...]                                         # (D, O_pad) f32 (zero-padded cols)
    xw = jnp.dot(x, wt, preferred_element_type=jnp.float32)  # (TB, O_pad)  MXU
    x2 = jnp.sum(x * x, axis=-1, keepdims=True)              # (TB, 1)
    w2 = jnp.sum(wt * wt, axis=0, keepdims=True)             # (1, O_pad)
    # clamp: exact value is a sum of squares (>= 0); guards f32 cancellation noise
    o_ref[...] = jnp.maximum(x2 - 2.0 * xw + w2, 0.0)


def rbf_units(x, param_vect, *, tile_b=512):
    """RBFUnits.forward.

    x:          (B, in_features) or (in_features,) float
    param_vect: (out_features, in_features) float  (digit templates)
    returns:    (B, out_features) or (out_features,) float32
    """
    x = jnp.asarray(x, jnp.float32)
    w = jnp.asarray(param_vect, jnp.float32)

    squeeze = (x.ndim == 1)
    if squeeze:
        x = x[None, :]
    B, D = x.shape
    O, D2 = w.shape
    assert D == D2, (D, D2)

    # Lane-dense output: pad the class axis to a multiple of 128 with all-zero
    # template rows (their distances are sliced away below).
    O_pad = _round_up(O, LANE)
    wt = jnp.zeros((D, O_pad), jnp.float32).at[:, :O].set(w.T)

    # Tile the batch axis. Small batches become a single (multiple-of-8) tile;
    # large batches stream in `tile_b`-row tiles through the pipelined grid.
    tb = tile_b if B > tile_b else _round_up(max(B, 1), SUBLANE)
    B_pad = _round_up(B, tb)
    if B_pad != B:
        x = jnp.pad(x, ((0, B_pad - B), (0, 0)))

    grid = (B_pad // tb,)
    out = pl.pallas_call(
        _rbf_kernel,
        out_shape=jax.ShapeDtypeStruct((B_pad, O_pad), jnp.float32),
        grid_spec=pltpu.PrefetchScalarGridSpec(
            num_scalar_prefetch=0,
            grid=grid,
            in_specs=[
                pl.BlockSpec((tb, D), lambda i: (i, 0)),        # batch tile of x
                pl.BlockSpec((D, O_pad), lambda i: (0, 0)),     # templates (resident)
            ],
            out_specs=pl.BlockSpec((tb, O_pad), lambda i: (i, 0)),
        ),
        compiler_params=pltpu.CompilerParams(
            dimension_semantics=("parallel",)),
    )(x, wt)

    out = out[:B, :O]
    if squeeze:
        out = out[0]
    return out


# ---------------------------------------------------------------------------
# Default digit templates (Figure 3 of the paper), shape (10, 12, 7)
# ---------------------------------------------------------------------------

_TEMPLATES = np.array([
  [[0,1,1,1,1,1,0],[0,0,0,0,0,0,0],[0,0,1,1,1,0,0],[0,1,1,0,1,1,0],[1,1,0,0,0,1,1],[1,1,0,0,0,1,1],
   [1,1,0,0,0,1,1],[1,1,0,0,0,1,1],[0,1,1,0,1,1,0],[0,0,1,1,1,0,0],[0,0,0,0,0,0,0],[0,0,0,0,0,0,0]],
  [[0,0,0,1,1,0,0],[0,0,1,1,1,0,0],[0,1,1,1,1,0,0],[0,0,0,1,1,0,0],[0,0,0,1,1,0,0],[0,0,0,1,1,0,0],
   [0,0,0,1,1,0,0],[0,0,0,1,1,0,0],[0,0,0,1,1,0,0],[0,1,1,1,1,1,1],[0,0,0,0,0,0,0],[0,0,0,0,0,0,0]],
  [[0,1,1,1,1,1,0],[0,0,0,0,0,0,0],[0,1,1,1,1,1,0],[1,1,0,0,0,1,1],[1,0,0,0,0,1,1],[0,0,0,0,1,1,0],
   [0,0,1,1,1,0,0],[0,1,1,0,0,0,0],[1,1,0,0,0,0,0],[1,1,1,1,1,1,1],[0,0,0,0,0,0,0],[0,0,0,0,0,0,0]],
  [[1,1,1,1,1,1,1],[0,0,0,0,0,1,1],[0,0,0,0,1,1,0],[0,0,0,1,1,0,0],[0,0,1,1,1,1,0],[0,0,0,0,0,1,1],
   [0,0,0,0,0,1,1],[0,0,0,0,0,1,1],[1,0,0,0,0,1,1],[0,1,1,1,1,1,0],[0,0,0,0,0,0,0],[0,0,0,0,0,0,0]],
  [[0,1,1,1,1,1,0],[0,0,0,0,0,0,0],[0,0,0,0,0,0,0],[0,1,1,0,0,1,1],[0,1,1,0,0,1,1],[1,1,1,0,0,1,1],
   [1,1,0,0,0,1,1],[1,1,0,0,0,1,1],[1,1,0,0,1,1,1],[0,1,1,1,1,1,1],[0,0,0,0,0,1,1],[0,0,0,0,0,1,1]],
  [[0,1,1,1,1,1,0],[0,0,0,0,0,0,0],[1,1,1,1,1,1,1],[1,1,0,0,0,0,0],[1,1,0,0,0,0,0],[0,1,1,1,1,0,0],
   [0,0,1,1,1,1,0],[0,0,0,0,0,1,1],[1,1,0,0,0,1,1],[0,1,1,1,1,1,0],[0,0,0,0,0,0,0],[0,0,0,0,0,0,0]],
  [[0,0,1,1,1,1,0],[0,1,1,0,0,0,0],[1,1,0,0,0,0,0],[1,1,0,0,0,0,0],[1,1,1,1,1,1,0],[1,1,1,0,0,1,1],
   [1,1,0,0,0,1,1],[1,1,0,0,0,1,1],[1,1,1,0,0,1,1],[0,1,1,1,1,1,0],[0,0,0,0,0,0,0],[0,0,0,0,0,0,0]],
  [[1,1,1,1,1,1,1],[0,0,0,0,0,1,1],[0,0,0,0,0,1,1],[0,0,0,0,1,1,0],[0,0,0,1,1,0,0],[0,0,0,1,1,0,0],
   [0,0,1,1,0,0,0],[0,0,1,1,0,0,0],[0,0,1,1,0,0,0],[0,0,1,1,0,0,0],[0,0,0,0,0,0,0],[0,0,0,0,0,0,0]],
  [[0,1,1,1,1,1,0],[1,1,0,0,0,1,1],[1,1,0,0,0,1,1],[1,1,0,0,0,1,1],[0,1,1,1,1,1,0],[1,1,0,0,0,1,1],
   [1,1,0,0,0,1,1],[1,1,0,0,0,1,1],[1,1,0,0,0,1,1],[0,1,1,1,1,1,0],[0,0,0,0,0,0,0],[0,0,0,0,0,0,0]],
  [[0,1,1,1,1,1,0],[1,1,0,0,1,1,1],[1,1,0,0,0,1,1],[1,1,0,0,0,1,1],[1,1,0,0,1,1,1],[0,1,1,1,1,1,1],
   [0,0,0,0,0,1,1],[0,0,0,0,0,1,1],[0,0,0,0,1,1,0],[0,1,1,1,1,0,0],[0,0,0,0,0,0,0],[0,0,0,0,0,0,0]],
], dtype=np.float32)


def default_param_vect():
    """RBFUnits default templates, {0,1} -> {-1,+1}, flattened to (10, 84)."""
    return jnp.asarray(_TEMPLATES * 2.0 - 1.0).reshape(10, 84)


# ---------------------------------------------------------------------------
# Demo / self-test
# ---------------------------------------------------------------------------

if __name__ == "__main__":
    key = jax.random.PRNGKey(0)
    B, IN_F, OUT_F = 2, 84, 10

    # F6-like inputs (A * tanh(...) squashed activations feeding the RBF head)
    x = 1.7159 * jnp.tanh(jax.random.normal(key, (B, IN_F), jnp.float32))
    w = default_param_vect()                                  # (10, 84)

    out = jax.jit(rbf_units)(x, w)
    out = jax.block_until_ready(out)

    # Pure-JAX reference (the original broadcast formulation)
    ref = jnp.sum((x[:, None, :] - w[None, :, :]) ** 2, axis=2)

    assert out.shape == (B, OUT_F), out.shape
    assert bool(jnp.all(jnp.isfinite(out)))
    assert bool(jnp.all(out >= 0.0))        # sum of squares is non-negative
    np.testing.assert_allclose(np.asarray(out), np.asarray(ref), rtol=1e-5, atol=1e-3)

    # unbatched path (module supports 1-D input)
    out1 = jax.block_until_ready(jax.jit(rbf_units)(x[0], w))
    assert out1.shape == (OUT_F,)
    np.testing.assert_allclose(np.asarray(out1), np.asarray(ref[0]), rtol=1e-5, atol=1e-3)

    print("KERNEL_OK")
</pallas_src>

<mosaic_0001>
module attributes {stable_mosaic.version = 11 : i64} {
  func.func @_rbf_kernel(%arg0: i32, %arg1: memref<8x84xf32, #tpu.memory_space<vmem>>, %arg2: memref<84x128xf32, #tpu.memory_space<vmem>>, %arg3: memref<8x128xf32, #tpu.memory_space<vmem>>) attributes {dimension_semantics = [#tpu.dimension_semantics<parallel>], iteration_bounds = array<i64: 1>, scalar_prefetch = 0 : i64, scratch_operands = 0 : i64, tpu.core_type = #tpu.core_type<tc>, window_params = [{transform_indices = @transform_0, window_bounds = array<i64: 8, 84>}, {pipeline_mode = #tpu.pipeline_mode<synchronous>, transform_indices = @transform_1, window_bounds = array<i64: 84, 128>}, {transform_indices = @transform_2, window_bounds = array<i64: 8, 128>}]} {
    %c0 = arith.constant 0 : index
    %c0_0 = arith.constant 0 : index
    %0 = vector.load %arg1[%c0, %c0_0] : memref<8x84xf32, #tpu.memory_space<vmem>>, vector<8x84xf32>
    %c0_1 = arith.constant 0 : index
    %c0_2 = arith.constant 0 : index
    %1 = vector.load %arg2[%c0_1, %c0_2] : memref<84x128xf32, #tpu.memory_space<vmem>>, vector<84x128xf32>
    %cst = arith.constant dense<0.000000e+00> : vector<8x128xf32>
    %2 = tpu.matmul %0, %1, %cst {dimension_numbers = #tpu.dot_dimension_numbers<[1], [0], [0], [1], [0, 0, 1, 1], [], []>} : vector<8x84xf32>, vector<84x128xf32>, vector<8x128xf32> -> vector<8x128xf32>
    %3 = arith.mulf %0, %0 : vector<8x84xf32>
    %cst_3 = arith.constant dense<0.000000e+00> : vector<8xf32>
    %4 = vector.multi_reduction <add>, %3, %cst_3 [1] : vector<8x84xf32> to vector<8xf32>
    %5 = vector.shape_cast %4 : vector<8xf32> to vector<8x1xf32>
    %6 = arith.mulf %1, %1 : vector<84x128xf32>
    %cst_4 = arith.constant dense<0.000000e+00> : vector<128xf32>
    %7 = vector.multi_reduction <add>, %6, %cst_4 [0] : vector<84x128xf32> to vector<128xf32>
    %8 = vector.shape_cast %7 : vector<128xf32> to vector<1x128xf32>
    %cst_5 = arith.constant 2.000000e+00 : f32
    %9 = vector.broadcast %cst_5 : f32 to vector<8x128xf32>
    %10 = arith.mulf %9, %2 : vector<8x128xf32>
    %11 = vector.broadcast %5 : vector<8x1xf32> to vector<8x128xf32>
    %12 = arith.subf %11, %10 : vector<8x128xf32>
    %13 = vector.broadcast %8 : vector<1x128xf32> to vector<8x128xf32>
    %14 = arith.addf %12, %13 : vector<8x128xf32>
    %cst_6 = arith.constant 0.000000e+00 : f32
    %15 = vector.broadcast %cst_6 : f32 to vector<8x128xf32>
    %16 = arith.maximumf %14, %15 : vector<8x128xf32>
    %c0_7 = arith.constant 0 : index
    %c0_8 = arith.constant 0 : index
    %17 = vector.load %arg3[%c0_7, %c0_8] : memref<8x128xf32, #tpu.memory_space<vmem>>, vector<8x128xf32>
    tpu.vector_store %arg3[%c0_7, %c0_8], %16 {strides = array<i32>} : memref<8x128xf32, #tpu.memory_space<vmem>>, vector<8x128xf32>,
    return
  }
  func.func @transform_0(%arg0: i32) -> (i32, i32) {
    %c0_i32 = arith.constant 0 : i32
    %c0_i32_0 = arith.constant 0 : i32
    return %arg0, %c0_i32 : i32, i32
  }
  func.func @transform_1(%arg0: i32) -> (i32, i32) {
    %c0_i32 = arith.constant 0 : i32
    %c0_i32_0 = arith.constant 0 : i32
    %c0_i32_1 = arith.constant 0 : i32
    return %c0_i32, %c0_i32_0 : i32, i32
  }
  func.func @transform_2(%arg0: i32) -> (i32, i32) {
    %c0_i32 = arith.constant 0 : i32
    %c0_i32_0 = arith.constant 0 : i32
    return %arg0, %c0_i32 : i32, i32
  }
}

</mosaic_0001>

<bundles_post_ra>
// kernel: rbf_units.1
= control target key start
LH: loop header
LB: loop body
LE: loop exit
PB: predicated region body
PF: predicated region fallthrough
CT: control target
= control target key end

     0   :  { %v199_v0 = vmov 0.0|0.0   ;;  %vm200_vm0 = vmmov 0   ;;  %v201_v4 = vmov 0.0   ;;  %vm27_vm1 = vcmask 1043456   ;;  %s260_s1 = inlined_call_operand.vmem [shape: f32[84,128], index: 1, kind: input, shape index: {}]   ;;  %s261_s0 = inlined_call_operand.vmem [shape: f32[8,84], index: 0, kind: input, shape index: {}]   ;;  %s262_s2 = inlined_call_operand.vmem [shape: f32[8,128], index: 2, kind: output, shape index: {}]  }
   0x1   :  { %181 = vmatprep.subr.bf16.mxu0 %v199_v0  ;;  %v12_v1 = vld [vmem:[%s260_s1] sm:$0xff]  ;;  %v13_v2 = vld [vmem:[%s260_s1 + $0x8] sm:$0xff]  ;;  %v14_v3 = vld [vmem:[%s260_s1 + $0x10] sm:$0xff]  ;;  %178 = vmatprep.mubr.msk.f32.mxu0 %vm200_vm0, %v201_v4  ;;  %vm23_vm2 = vcmask 687104  }
   0x2   :  { %v182_v5 = vpack.c.bf16 %v13_v2, %v12_v1  ;;  %v105_v6 = vmul.f32 %v12_v1, %v12_v1  ;;  %v106_v7 = vmul.f32 %v13_v2, %v13_v2  ;;  %v15_v8 = vld [vmem:[%s260_s1 + $0x18] sm:$0xff]  ;;  %v107_v9 = vmul.f32 %v14_v3, %v14_v3  ;;  %v16_v13 = vld [vmem:[%s260_s1 + $0x20] sm:$0xff]  ;;  %v17_v14 = vld [vmem:[%s260_s1 + $0x28] sm:$0xff] }
   0x3   :  { %v185_v11 = vpack.c.bf16 %v15_v8, %v14_v3  ;;  %v108_v12 = vmul.f32 %v15_v8, %v15_v8  ;;  %v22_v15 = vld [vmem:[%s260_s1 + $0x50] sm:$0xf]  ;;  %v11_v16 = vld [vmem:[%s261_s0] sm:$0xff]  ;;  %v109_v18 = vmul.f32 %v16_v13, %v16_v13  ;;  %v188_v21 = vpack.c.bf16 %v17_v14, %v16_v13  ;;  %v19_v27 = vld [vmem:[%s260_s1 + $0x38] sm:$0xff] }
   0x4   :  { %183 = vmatpush3.bf16.msra.mxu0 %v182_v5  ;;  %v116_v10 = vadd.f32 %v106_v7, %v105_v6  ;;  %v115_v19 = vmul.f32 %v22_v15, %v22_v15  ;;  %v101_v20 = vmul.f32 %v11_v16, %v11_v16  ;;  %v110_v23 = vmul.f32 %v17_v14, %v17_v14  ;;  %v18_v26 = vld [vmem:[%s260_s1 + $0x30] sm:$0xff]  ;;  %v20_v33 = vld [vmem:[%s260_s1 + $0x40] sm:$0xff]  ;;  %v21_v34 = vld [vmem:[%s260_s1 + $0x48] sm:$0xff] }
   0x5   :  { %184 = vmatprep.subr.bf16.mxu0 %v199_v0  ;;  %v111_v29 = vmul.f32 %v18_v26, %v18_v26  ;;  %v191_v31 = vpack.c.bf16 %v19_v27, %v18_v26  ;;  %v112_v32 = vmul.f32 %v19_v27, %v19_v27  ;;  %v113_v36 = vmul.f32 %v20_v33, %v20_v33 }
   0x6   :  { %v117_v17 = vadd.f32 %v116_v10, %v107_v9  ;;  %v125_v24 = vsel %vm27_vm1, %v115_v19, 0.0  ;;  %v102_v25 = vsel %vm23_vm2, %v101_v20, 0.0  ;;  %v194_v38 = vpack.c.bf16 %v21_v34, %v20_v33 }
   0x7   :  { %103 = vadd.xlane.f32.xlu0 %v102_v25  ;;  %v114_v39 = vmul.f32 %v21_v34, %v21_v34 }
   0x8   :  { %186 = vmatpush3.bf16.msra.mxu0 %v185_v11  ;;  %v118_v22 = vadd.f32 %v117_v17, %v108_v12 }
   0x9   :  { %187 = vmatprep.subr.bf16.mxu0 %v199_v0 }
   0xa   :  { %v119_v28 = vadd.f32 %v118_v22, %v109_v18 }
   0xc   :  { %189 = vmatpush3.bf16.msra.mxu0 %v188_v21  ;;  %v120_v30 = vadd.f32 %v119_v28, %v110_v23 }
   0xd   :  { %190 = vmatprep.subr.bf16.mxu0 %v199_v0 }
   0xe   :  { %v121_v35 = vadd.f32 %v120_v30, %v111_v29 }
  0x10   :  { %192 = vmatpush3.bf16.msra.mxu0 %v191_v31  ;;  %v122_v37 = vadd.f32 %v121_v35, %v112_v32 }
  0x11   :  { %193 = vmatprep.subr.bf16.mxu0 %v199_v0 }
  0x12   :  { %v123_v40 = vadd.f32 %v122_v37, %v113_v36 }
  0x14   :  { %195 = vmatpush3.bf16.msra.mxu0 %v194_v38  ;;  %v124_v41 = vadd.f32 %v123_v40, %v114_v39 }
  0x15   :  { %176 = vmatprep.subr.mxu0 %v201_v4 }
  0x16   :  { %v126_v42 = vadd.f32 %v125_v24, %v124_v41 }
  0x18   :  { %177 = vmatpush3.msk.msra.mxu0 %vm27_vm1, %v22_v15  ;;  %v127_v43 = vrot.slane %v126_v42, 4 }
  0x19   :  { %179 = vmatmul.mubr.msk.f32.vlgmr.msra.gmra.mrb[0].mxu0 %vm23_vm2, %v11_v16 }
  0x1a   :  { %v128_v44 = vadd.f32 %v127_v43, %v126_v42 }
  0x1c   :  { %v129_v45 = vrot.slane %v128_v44, 2 }
  0x1e   :  { %v130_v46 = vadd.f32 %v129_v45, %v128_v44 }
  0x20   :  { %v131_v47 = vrot.slane %v130_v46, 1 }
  0x22   :  { %v132_v52 = vadd.f32 %v131_v47, %v130_v46 }
  0x94   :  { %v104_v49 = vpop.xlane.xlu0 %103 }
  0xec   :  { %v97_v48 = vpop.f32.mrb[0].mxu0 }
  0xed   :  { %v133_v50 = vmul.f32 2.0, %v97_v48  ;;  %v180_v51 = vpop.f32.mrb[1].mxu0 }
  0xef   :  { %v134_v53 = vsub.f32 %v104_v49, %v133_v50 }
  0xf1   :  { %v135_v54 = vadd.f32 %v134_v53, %v132_v52 }
  0xf3   :  { %v136_v55 = vmax.f32 %v135_v54, 0.0 }
  0xf5   :  { %137 = vst [vmem:[%s262_s2] sm:$0xff] %v136_v55 }

</bundles_post_ra>
